<compile_context>
chip_gen: v5e
topology: v5e:2x2
jax: 0.10.0
libtpu: 0.0.40
codegen_flags: <defaults>
</compile_context>

<pallas_src>
import functools

import jax
import jax.numpy as jnp
from jax import lax
from jax.experimental import pallas as pl
from jax.experimental.pallas import tpu as pltpu


def _round_up(x, m):
    return ((x + m - 1) // m) * m


def _dropout_mask(key, shape, p, dtype):
    """Pre-scaled dropout mask: 0 where dropped, 1/(1-p) where kept."""
    keep = jax.random.bernoulli(key, 1.0 - float(p), shape)
    return keep.astype(dtype) * jnp.asarray(1.0 / (1.0 - float(p)), dtype)


def _classifier_flat_kernel(*refs, use_dropout, softmax, n_classes):
    """Grid = (B tiles, class tiles, K tiles); K is the last (arbitrary) reduction axis."""
    if use_dropout:
        mask_ref, x_ref, w_ref, b_ref, o_ref, acc_ref = refs
    else:
        x_ref, w_ref, b_ref, o_ref, acc_ref = refs
        mask_ref = None

    # Grid indices read at kernel top level only (never inside pl.when bodies).
    k = pl.program_id(2)
    num_k = pl.num_programs(2)

    @pl.when(k == 0)
    def _():
        acc_ref[...] = jnp.zeros_like(acc_ref)

    x = x_ref[...]  # (tm, tk), native dtype

    if mask_ref is not None:
        # F.dropout(x, p, training=True): mask is pre-scaled (0 or 1/(1-p)),
        # tiled identically to x, so a single vector multiply applies it.
        # TODO(synk): on pure-TPU deployments this mask stream can be replaced
        # by in-kernel pltpu.prng_seed / prng_random_bits to save one x-sized
        # HBM read; kept portable here.
        x = x * mask_ref[...]

    # MXU matmul contracting the feature axis of both operands (torch weight
    # layout (n_classes, n_inputs) used directly, no transpose materialized).
    acc_ref[...] += lax.dot_general(
        x, w_ref[...],
        dimension_numbers=(((1,), (1,)), ((), ())),
        preferred_element_type=jnp.float32)

    @pl.when(k == num_k - 1)
    def _():
        y = acc_ref[...] + b_ref[...].astype(jnp.float32)   # bias added once
        if softmax:
            tm, tn = y.shape
            # With softmax the class tile spans the whole padded class row,
            # so the column index needs no grid offset.
            if n_classes < tn:
                col = lax.broadcasted_iota(jnp.int32, (tm, tn), 1)
                y = jnp.where(col < n_classes, y, -jnp.inf)   # mask class padding
            m = jnp.max(y, axis=-1, keepdims=True)
            e = jnp.exp(y - m)
            s = jnp.sum(e, axis=-1, keepdims=True)
            y = e / s
        o_ref[...] = y.astype(o_ref.dtype)


def classifier_flat(x, w, b, *, dropout_p=0.5, training=False, softmax=False,
                    rng_key=None, tm=None, tn=None, tk=None):
    """Pallas implementation of ClassifierFlat.forward.

    x: (B, n_inputs); w: (n_classes, n_inputs) torch layout; b: (n_classes,).
    """
    B, K = x.shape
    N, Kw = w.shape
    assert Kw == K, "weight must be (n_classes, n_inputs)"

    use_dropout = bool(training) and float(dropout_p) > 0.0

    # (8,128)-aligned, lane-dense tiles; modest caps keep VMEM well under the
    # scoped limit on every generation (v5e/v6e/v7x).
    B_align = _round_up(max(B, 1), 8)
    K_align = _round_up(max(K, 1), 128)
    N_align = _round_up(max(N, 1), 128)

    if tm is None:
        tm = min(256, B_align)
    if tk is None:
        tk = min(512, K_align)
    if tn is None:
        tn = min(256, N_align)
    if softmax:
        # softmax reduces over the class axis -> keep the full (padded) class
        # row in a single tile so the reduction stays inside one block.
        # TODO(synk): for very large n_classes this should become a two-pass
        # (max/sum then normalize) tiled softmax.
        tn = N_align

    B_pad = _round_up(B, tm)
    K_pad = _round_up(K, tk)
    N_pad = _round_up(N, tn)

    x_p = jnp.pad(x, ((0, B_pad - B), (0, K_pad - K)))
    w_p = jnp.pad(w, ((0, N_pad - N), (0, K_pad - K)))             # stays (N, K)
    b_p = jnp.pad(jnp.asarray(b).reshape(1, N), ((0, 0), (0, N_pad - N)))

    operands = []
    in_specs = []
    if use_dropout:
        if rng_key is None:
            rng_key = jax.random.PRNGKey(0)
        mask = _dropout_mask(rng_key, (B, K), dropout_p, x.dtype)
        mask_p = jnp.pad(mask, ((0, B_pad - B), (0, K_pad - K)))
        operands.append(mask_p)
        in_specs.append(pl.BlockSpec((tm, tk), lambda i, j, k: (i, k)))  # mask ~ x tiling
    operands += [x_p, w_p, b_p]
    in_specs += [
        pl.BlockSpec((tm, tk), lambda i, j, k: (i, k)),   # x
        pl.BlockSpec((tn, tk), lambda i, j, k: (j, k)),   # w (torch layout)
        pl.BlockSpec((1, tn), lambda i, j, k: (0, j)),    # bias
    ]

    grid = (B_pad // tm, N_pad // tn, K_pad // tk)

    kernel = functools.partial(
        _classifier_flat_kernel,
        use_dropout=use_dropout,
        softmax=bool(softmax),
        n_classes=int(N),
    )

    out = pl.pallas_call(
        kernel,
        out_shape=jax.ShapeDtypeStruct((B_pad, N_pad), x.dtype),
        grid_spec=pltpu.PrefetchScalarGridSpec(
            num_scalar_prefetch=0,
            grid=grid,
            in_specs=in_specs,
            out_specs=pl.BlockSpec((tm, tn), lambda i, j, k: (i, j)),
            scratch_shapes=[pltpu.VMEM((tm, tn), jnp.float32)],     # f32 accumulator
        ),
        compiler_params=pltpu.CompilerParams(
            # batch / class tiles are independent (megacore-shardable);
            # K is the reduction axis and must stay sequential.
            dimension_semantics=("parallel", "parallel", "arbitrary"),
        ),
    )(*operands)

    return out[:B, :N]


if __name__ == "__main__":
    key = jax.random.PRNGKey(0)

    # --- test 1: small shapes, eval mode (dropout = identity) ---
    B, n_inputs, n_classes = 8, 32, 16
    kx, kw, kb, kd = jax.random.split(key, 4)
    x = jax.random.normal(kx, (B, n_inputs), dtype=jnp.float32)
    bound = 1.0 / (n_inputs ** 0.5)
    w = jax.random.uniform(kw, (n_classes, n_inputs), jnp.float32, -bound, bound)
    b = jax.random.uniform(kb, (n_classes,), jnp.float32, -bound, bound)

    out = jax.block_until_ready(
        classifier_flat(x, w, b, dropout_p=0.5, training=False, softmax=False))
    ref = x @ w.T + b
    assert out.shape == (B, n_classes)
    assert jnp.allclose(out, ref, atol=1e-5, rtol=1e-5), "linear mismatch"

    out_sm = jax.block_until_ready(
        classifier_flat(x, w, b, training=False, softmax=True))
    ref_sm = jax.nn.softmax(ref, axis=1)
    assert jnp.allclose(out_sm, ref_sm, atol=1e-5, rtol=1e-4), "softmax mismatch"

    # --- test 2: unaligned shapes to exercise the padding / masking paths ---
    B2, K2, N2 = 40, 200, 10
    kx2, kw2, kb2 = jax.random.split(jax.random.PRNGKey(1), 3)
    x2 = jax.random.normal(kx2, (B2, K2), dtype=jnp.float32)
    bound2 = 1.0 / (K2 ** 0.5)
    w2 = jax.random.uniform(kw2, (N2, K2), jnp.float32, -bound2, bound2)
    b2 = jax.random.uniform(kb2, (N2,), jnp.float32, -bound2, bound2)

    out2 = jax.block_until_ready(
        classifier_flat(x2, w2, b2, training=False, softmax=False))
    ref2 = x2 @ w2.T + b2
    assert out2.shape == (B2, N2)
    assert jnp.allclose(out2, ref2, atol=1e-4, rtol=1e-4), "unaligned linear mismatch"

    out2_sm = jax.block_until_ready(
        classifier_flat(x2, w2, b2, training=False, softmax=True))
    ref2_sm = jax.nn.softmax(ref2, axis=1)
    assert jnp.allclose(out2_sm, ref2_sm, atol=1e-5, rtol=1e-4), "unaligned softmax mismatch"

    # --- test 3: training-mode dropout path (exact ref with the same mask) ---
    p = 0.5
    out_tr = jax.block_until_ready(
        classifier_flat(x, w, b, dropout_p=p, training=True, softmax=False, rng_key=kd))
    mask_ref = _dropout_mask(kd, (B, n_inputs), p, x.dtype)
    ref_tr = (x * mask_ref) @ w.T + b
    assert out_tr.shape == (B, n_classes)
    assert jnp.allclose(out_tr, ref_tr, atol=1e-5, rtol=1e-5), "dropout mismatch"

    print("KERNEL_OK")
</pallas_src>

<mosaic_0001>
module attributes {stable_mosaic.version = 11 : i64} {
  func.func @_classifier_flat_kernel(%arg0: i32, %arg1: i32, %arg2: i32, %arg3: memref<8x128xf32, #tpu.memory_space<vmem>>, %arg4: memref<128x128xf32, #tpu.memory_space<vmem>>, %arg5: memref<1x128xf32, #tpu.memory_space<vmem>>, %arg6: memref<8x128xf32, #tpu.memory_space<vmem>>, %arg7: memref<8x128xf32, #tpu.memory_space<vmem>>) attributes {dimension_semantics = [#tpu.dimension_semantics<parallel>, #tpu.dimension_semantics<parallel>, #tpu.dimension_semantics<arbitrary>], iteration_bounds = array<i64: 1, 1, 1>, scalar_prefetch = 0 : i64, scratch_operands = 1 : i64, tpu.core_type = #tpu.core_type<tc>, window_params = [{transform_indices = @transform_0, window_bounds = array<i64: 8, 128>}, {transform_indices = @transform_1, window_bounds = array<i64: 128, 128>}, {transform_indices = @transform_2, window_bounds = array<i64: 1, 128>}, {transform_indices = @transform_3, window_bounds = array<i64: 8, 128>}]} {
    %c0_i32 = arith.constant 0 : i32
    %0 = arith.cmpi eq, %arg2, %c0_i32 : i32
    %1 = arith.extui %0 : i1 to i32
    %c0_i32_0 = arith.constant 0 : i32
    %2 = arith.cmpi ne, %1, %c0_i32_0 : i32
    scf.if %2 {
      %cst_10 = arith.constant 0.000000e+00 : f32
      %12 = vector.broadcast %cst_10 : f32 to vector<8x128xf32>
      %c0_11 = arith.constant 0 : index
      %c0_12 = arith.constant 0 : index
      %13 = vector.load %arg7[%c0_11, %c0_12] : memref<8x128xf32, #tpu.memory_space<vmem>>, vector<8x128xf32>
      tpu.vector_store %arg7[%c0_11, %c0_12], %12 {strides = array<i32>} : memref<8x128xf32, #tpu.memory_space<vmem>>, vector<8x128xf32>,
    } else {
    }
    %c0 = arith.constant 0 : index
    %c0_1 = arith.constant 0 : index
    %3 = vector.load %arg3[%c0, %c0_1] : memref<8x128xf32, #tpu.memory_space<vmem>>, vector<8x128xf32>
    %c0_2 = arith.constant 0 : index
    %c0_3 = arith.constant 0 : index
    %4 = vector.load %arg7[%c0_2, %c0_3] : memref<8x128xf32, #tpu.memory_space<vmem>>, vector<8x128xf32>
    %c0_4 = arith.constant 0 : index
    %c0_5 = arith.constant 0 : index
    %5 = vector.load %arg4[%c0_4, %c0_5] : memref<128x128xf32, #tpu.memory_space<vmem>>, vector<128x128xf32>
    %cst = arith.constant dense<0.000000e+00> : vector<8x128xf32>
    %6 = tpu.matmul %3, %5, %cst {dimension_numbers = #tpu.dot_dimension_numbers<[1], [1], [0], [0], [0, 0, 1, 0], [], []>} : vector<8x128xf32>, vector<128x128xf32>, vector<8x128xf32> -> vector<8x128xf32>
    %7 = arith.addf %4, %6 : vector<8x128xf32>
    %c0_6 = arith.constant 0 : index
    %c0_7 = arith.constant 0 : index
    %8 = vector.load %arg7[%c0_6, %c0_7] : memref<8x128xf32, #tpu.memory_space<vmem>>, vector<8x128xf32>
    tpu.vector_store %arg7[%c0_6, %c0_7], %7 {strides = array<i32>} : memref<8x128xf32, #tpu.memory_space<vmem>>, vector<8x128xf32>,
    %c0_i32_8 = arith.constant 0 : i32
    %9 = arith.cmpi eq, %arg2, %c0_i32_8 : i32
    %10 = arith.extui %9 : i1 to i32
    %c0_i32_9 = arith.constant 0 : i32
    %11 = arith.cmpi ne, %10, %c0_i32_9 : i32
    scf.if %11 {
      %c0_10 = arith.constant 0 : index
      %c0_11 = arith.constant 0 : index
      %12 = vector.load %arg7[%c0_10, %c0_11] : memref<8x128xf32, #tpu.memory_space<vmem>>, vector<8x128xf32>
      %c0_12 = arith.constant 0 : index
      %c0_13 = arith.constant 0 : index
      %13 = vector.load %arg5[%c0_12, %c0_13] : memref<1x128xf32, #tpu.memory_space<vmem>>, vector<1x128xf32>
      %14 = vector.broadcast %13 : vector<1x128xf32> to vector<8x128xf32>
      %15 = arith.addf %12, %14 : vector<8x128xf32>
      %c0_14 = arith.constant 0 : index
      %c0_15 = arith.constant 0 : index
      %16 = vector.load %arg6[%c0_14, %c0_15] : memref<8x128xf32, #tpu.memory_space<vmem>>, vector<8x128xf32>
      tpu.vector_store %arg6[%c0_14, %c0_15], %15 {strides = array<i32>} : memref<8x128xf32, #tpu.memory_space<vmem>>, vector<8x128xf32>,
    } else {
    }
    return
  }
  func.func @transform_0(%arg0: i32, %arg1: i32, %arg2: i32) -> (i32, i32) {
    %c0_i32 = arith.constant 0 : i32
    return %arg0, %arg2 : i32, i32
  }
  func.func @transform_1(%arg0: i32, %arg1: i32, %arg2: i32) -> (i32, i32) {
    %c0_i32 = arith.constant 0 : i32
    return %arg1, %arg2 : i32, i32
  }
  func.func @transform_2(%arg0: i32, %arg1: i32, %arg2: i32) -> (i32, i32) {
    %c0_i32 = arith.constant 0 : i32
    %c0_i32_0 = arith.constant 0 : i32
    return %c0_i32, %arg1 : i32, i32
  }
  func.func @transform_3(%arg0: i32, %arg1: i32, %arg2: i32) -> (i32, i32) {
    %c0_i32 = arith.constant 0 : i32
    return %arg0, %arg1 : i32, i32
  }
}

</mosaic_0001>

<bundles_post_ra>
// kernel: tpu_custom_call.1
= control target key start
LH: loop header
LB: loop body
LE: loop exit
PB: predicated region body
PF: predicated region fallthrough
CT: control target
= control target key end

     0   :  { %8 = vsyncpa [#allocation4], 0  ;;  %s239_s0 = inlined_call_operand.hbm [shape: f32[8,128], index: 0, kind: input, shape index: {}]   ;;  %s240_s1 = inlined_call_operand.hbm [shape: f32[128,128], index: 1, kind: input, shape index: {}]   ;;  %s241_s2 = inlined_call_operand.vmem [shape: f32[1,128], index: 2, kind: input, shape index: {}]   ;;  %s242_s3 = inlined_call_operand.hbm [shape: f32[8,128], index: 3, kind: output, shape index: {}]  }
   0x1   :  { %9 = vsyncpa [#allocation7], 0 }
   0x2   :  { %10 = vsyncpa [#allocation5], 0  ;;  %s16_s14 = sshll.u32 %s239_s0, 4  ;;  %s202_s15 = smov [#allocation3]   ;;  %s17_s14 = int_to_ptr.hbm [resolvable:$true] %s16_s14 }
   0x3   :  { %s18_s16 = sshll.u32 %s202_s15, 4  ;;  %s26_s19 = sshll.u32 %s240_s1, 4  ;;  %s19_s16 = int_to_ptr.vmem [resolvable:$true] %s18_s16  ;;  %s27_s19 = int_to_ptr.hbm [resolvable:$true] %s26_s19 }
   0x4   :  { %21 = dma.hbm_to_vmem [thread:$0]  %s17_s14, 128, %s19_s16, [#allocation4]  }
   0x5   :  { %s203_s20 = smov [#allocation6]   ;;  %s204_s22 = smov 128  }
   0x6   :  { %s28_s21 = sshll.u32 %s203_s20, 4  ;;  %s205_s23 = smov 8   ;;  %s29_s21 = int_to_ptr.vmem [resolvable:$true] %s28_s21 }
   0x7   :  { %34 = dma.hbm_to_vmem [thread:$0]  %s27_s19, 2048, %s29_s21, [#allocation7], %s204_s22, %s204_s22, %s205_s23  }
   0x8   :  { %196 = dma.done.wait [#allocation4], 128  }
   0x9   :  { %197 = vsyncadd [#allocation4], 4294967168 }
   0xa   :  { %198 = dma.done.wait [#allocation7], 2048  }
   0xb   :  { %199 = vsyncadd [#allocation7], 4294965248  ;;  %v67_v0 = vld [vmem:[#allocation6 + $0x78] sm:$0xff]  ;;  %v66_v1 = vld [vmem:[#allocation6 + $0x70] sm:$0xff]  ;;  %s206_s24 = smov [#allocation8]   ;;  %s107_s28 = sshll.u32 %s242_s3, 4  ;;  %s108_s28 = int_to_ptr.hbm [resolvable:$true] %s107_s28 }
   0xc   :  { %68 = vmatpush.xpose.msra.mxu0 %v67_v0  ;;  %v65_v2 = vld [vmem:[#allocation6 + $0x68] sm:$0xff]  ;;  %v64_v3 = vld [vmem:[#allocation6 + $0x60] sm:$0xff]  ;;  %v63_v4 = vld [vmem:[#allocation6 + $0x58] sm:$0xff]  ;;  %s105_s25 = sshll.u32 %s206_s24, 4  ;;  %s106_s25 = int_to_ptr.vmem [resolvable:$true] %s105_s25 }
   0xd   :  { %v62_v5 = vld [vmem:[#allocation6 + $0x50] sm:$0xff]  ;;  %v61_v6 = vld [vmem:[#allocation6 + $0x48] sm:$0xff]  ;;  %v60_v7 = vld [vmem:[#allocation6 + $0x40] sm:$0xff] }
   0xe   :  { %v59_v8 = vld [vmem:[#allocation6 + $0x38] sm:$0xff]  ;;  %v58_v9 = vld [vmem:[#allocation6 + $0x30] sm:$0xff]  ;;  %v57_v10 = vld [vmem:[#allocation6 + $0x28] sm:$0xff] }
   0xf   :  { %v56_v11 = vld [vmem:[#allocation6 + $0x20] sm:$0xff]  ;;  %v55_v12 = vld [vmem:[#allocation6 + $0x18] sm:$0xff]  ;;  %v54_v13 = vld [vmem:[#allocation6 + $0x10] sm:$0xff] }
  0x10   :  { %69 = vmatpush.xpose.msra.mxu0 %v66_v1  ;;  %v53_v14 = vld [vmem:[#allocation6 + $0x8] sm:$0xff]  ;;  %v52_v15 = vld [vmem:[#allocation6] sm:$0xff]  ;;  %v50_v16 = vld [vmem:[#allocation3] sm:$0xff] }
  0x11   :  { %v123_v17 = vld [vmem:[%s241_s2] ss:$0 sm:$0xff] }
  0x14   :  { %70 = vmatpush.xpose.msra.mxu0 %v65_v2 }
  0x18   :  { %71 = vmatpush.xpose.msra.mxu0 %v64_v3 }
  0x1c   :  { %72 = vmatpush.xpose.msra.mxu0 %v63_v4 }
  0x20   :  { %73 = vmatpush.xpose.msra.mxu0 %v62_v5 }
  0x24   :  { %74 = vmatpush.xpose.msra.mxu0 %v61_v6 }
  0x28   :  { %75 = vmatpush.xpose.msra.mxu0 %v60_v7 }
  0x2c   :  { %76 = vmatpush.xpose.msra.mxu0 %v59_v8 }
  0x30   :  { %77 = vmatpush.xpose.msra.mxu0 %v58_v9 }
  0x34   :  { %78 = vmatpush.xpose.msra.mxu0 %v57_v10 }
  0x38   :  { %79 = vmatpush.xpose.msra.mxu0 %v56_v11 }
  0x3c   :  { %80 = vmatpush.xpose.msra.mxu0 %v55_v12 }
  0x40   :  { %81 = vmatpush.xpose.msra.mxu0 %v54_v13 }
  0x44   :  { %82 = vmatpush.xpose.msra.mxu0 %v53_v14 }
  0x48   :  { %83 = vmatpush.xpose.msra.mxu0 %v52_v15 }
  0x4b   :  { %84 = vmatmul.f32.vlgmr.msra.gmra.mxu0 %v50_v16 }
  0xc8   :  { %v85_v18 = vpop.f32.mrf.mxu0 }
  0xc9   :  { %v98_v19 = vadd.f32 %v123_v17, %v85_v18 }
  0xcb   :  { %99 = vst [vmem:[#allocation8] sm:$0xff] %v98_v19 }
  0xcc   :  { %110 = dma.vmem_to_hbm [thread:$0]  %s106_s25, 128, %s108_s28, [#allocation5]  }
  0xcd   :  { %200 = dma.done.wait [#allocation5], 128  }
  0xce   :  { %201 = vsyncadd [#allocation5], 4294967168 }
  0xcf   :  { %115 = vsyncpa [#allocation4], 1 }
  0xd0   :  { %116 = vsyncpa [#allocation7], 1 }
  0xd1   :  { %117 = vsyncpa [#allocation5], 1 }

</bundles_post_ra>
